<compile_context>
chip_gen: v7x
topology: tpu7x:2x2x1
jax: 0.10.0
libtpu: 0.0.40
codegen_flags: <defaults>
</compile_context>

<pallas_src>
import functools
import math

import jax
import jax.numpy as jnp
from jax.experimental import pallas as pl
from jax.experimental.pallas import tpu as pltpu

_NEG_INF = -1000000000.0  # matches torch masked_fill(mask, -1e9)


# ----------------------------- Pallas kernel --------------------------------
def _sdpa_kernel(*refs, scale, heads_per_mask, has_mask):
    if has_mask:
        q_ref, k_ref, v_ref, m_ref, out_ref, attn_ref = refs
    else:
        q_ref, k_ref, v_ref, out_ref, attn_ref = refs
        m_ref = None

    q = q_ref[...]  # [bh_blk, Lq, E]  float32
    k = k_ref[...]  # [bh_blk, Lk, E]
    v = v_ref[...]  # [bh_blk, Lk, E]

    # scores = (q @ k^T) / sqrt(E); contract on E directly (no K transpose).
    s = jnp.einsum("bqd,bkd->bqk", q, k, preferred_element_type=jnp.float32) * scale

    if m_ref is not None:
        m = m_ref[...]  # [bm_blk, Lq, Lk] float32, >0 means "mask out"
        if heads_per_mask == 1:
            s = jnp.where(m > 0.0, _NEG_INF, s)
        else:
            # Head-shared mask: broadcast across heads in-register (no HBM copy).
            bm, lq, lk = m.shape
            s4 = s.reshape(bm, heads_per_mask, lq, lk)
            s4 = jnp.where(m[:, None, :, :] > 0.0, _NEG_INF, s4)
            s = s4.reshape(bm * heads_per_mask, lq, lk)

    # numerically stable softmax over keys
    s = s - jnp.max(s, axis=-1, keepdims=True)
    p = jnp.exp(s)
    denom = jnp.sum(p, axis=-1, keepdims=True)
    p = p * pl.reciprocal(denom, approx=True)  # EUP slot; frees VALU

    attn_ref[...] = p.astype(attn_ref.dtype)
    out_ref[...] = jnp.einsum(
        "bqk,bkd->bqd", p, v, preferred_element_type=jnp.float32
    ).astype(out_ref.dtype)


# ----------------------------- wrapper helpers -------------------------------
def _plan_mask(lead_q, mask_shape):
    """If the mask's leading dims (right-aligned with q's) are a prefix equal to
    lead_q followed by all-ones, return (flat_mask_batch, heads_per_mask); else None."""
    if len(mask_shape) < 2:
        return None
    lead_m = tuple(mask_shape[:-2])
    if len(lead_m) > len(lead_q):
        extra = lead_m[: len(lead_m) - len(lead_q)]
        if any(d != 1 for d in extra):
            return None
        lead_m = lead_m[len(lead_m) - len(lead_q):]
    lead_m = (1,) * (len(lead_q) - len(lead_m)) + lead_m
    i = len(lead_q)
    while i > 0 and lead_m[i - 1] == 1:
        i -= 1
    if tuple(lead_m[:i]) != tuple(lead_q[:i]):
        return None
    bm = math.prod(lead_q[:i])
    heads_per_mask = math.prod(lead_q[i:])
    return bm, heads_per_mask


def _padded_bytes(rows, cols, itemsize=4):
    """VMEM footprint of a [rows, cols] f32 slab after (8, 128) tiling."""
    return ((rows + 7) // 8) * 8 * ((cols + 127) // 128) * 128 * itemsize


def _choose_head_block(BH, Lq, Lk, E, heads_per_mask, has_mask,
                       budget_bytes=12 * 1024 * 1024):
    """Largest head-block (multiple of heads_per_mask, dividing BH) that keeps
    the double-buffered VMEM working set under budget."""
    per_head = (
        _padded_bytes(Lq, E)          # q
        + 2 * _padded_bytes(Lk, E)    # k, v
        + _padded_bytes(Lq, E)        # out
        + _padded_bytes(Lq, Lk)       # attn
    )
    per_mask = _padded_bytes(Lq, Lk) if has_mask else 0
    bm_total = BH // heads_per_mask
    best = 1
    for d in range(bm_total, 0, -1):
        if bm_total % d != 0:
            continue
        bh_blk = d * heads_per_mask
        total = 2 * (bh_blk * per_head + d * per_mask)  # x2: double buffering
        if total <= budget_bytes:
            best = d
            break
    return best * heads_per_mask, best  # (head block, mask block)


# ----------------------------- public wrapper ---------------------------------
def scaled_dot_product_attention(query, key, value, attn_mask=None):
    """query: [..., Lq, E]; key/value: [..., Lk, E]; attn_mask broadcastable to
    [..., Lq, Lk] with True/nonzero == masked out. Returns (output, attn)."""
    *lead, Lq, E = query.shape
    lead = tuple(lead)
    Lk = key.shape[-2]
    BH = math.prod(lead) if lead else 1

    q = query.reshape(BH, Lq, E)
    k = key.reshape(BH, Lk, E)
    v = value.reshape(BH, Lk, E)

    scale = 1.0 / math.sqrt(float(E))
    out_dtype = query.dtype
    has_mask = attn_mask is not None

    if has_mask:
        plan = _plan_mask(lead, attn_mask.shape)
        if plan is None:
            # General fallback: fully broadcast once in the wrapper.
            m = jnp.broadcast_to(attn_mask, lead + (Lq, Lk)).reshape(BH, Lq, Lk)
            bm, heads_per_mask = BH, 1
        else:
            bm, heads_per_mask = plan
            m_lq, m_lk = attn_mask.shape[-2], attn_mask.shape[-1]
            m = jnp.broadcast_to(attn_mask.reshape(bm, m_lq, m_lk), (bm, Lq, Lk))
        m = m.astype(jnp.float32)
    else:
        heads_per_mask = 1

    # VMEM-aware blocking over the flattened head axis (single step when tiny).
    bh_blk, bm_blk = _choose_head_block(BH, Lq, Lk, E, heads_per_mask, has_mask)
    grid = (BH // bh_blk,)

    kernel = functools.partial(
        _sdpa_kernel, scale=scale, heads_per_mask=heads_per_mask, has_mask=has_mask
    )

    in_specs = [
        pl.BlockSpec((bh_blk, Lq, E), lambda i: (i, 0, 0)),
        pl.BlockSpec((bh_blk, Lk, E), lambda i: (i, 0, 0)),
        pl.BlockSpec((bh_blk, Lk, E), lambda i: (i, 0, 0)),
    ]
    args = [q, k, v]
    if has_mask:
        in_specs.append(pl.BlockSpec((bm_blk, Lq, Lk), lambda i: (i, 0, 0)))
        args.append(m)

    out_shape = (
        jax.ShapeDtypeStruct((BH, Lq, E), out_dtype),
        jax.ShapeDtypeStruct((BH, Lq, Lk), out_dtype),
    )
    out_specs = (
        pl.BlockSpec((bh_blk, Lq, E), lambda i: (i, 0, 0)),
        pl.BlockSpec((bh_blk, Lq, Lk), lambda i: (i, 0, 0)),
    )

    out, attn = pl.pallas_call(
        kernel,
        out_shape=out_shape,
        grid=grid,
        in_specs=in_specs,
        out_specs=out_specs,
        compiler_params=pltpu.CompilerParams(dimension_semantics=("parallel",)),
    )(*args)

    return out.reshape(*lead, Lq, E), attn.reshape(*lead, Lq, Lk)


# ----------------------------- main ------------------------------------------
if __name__ == "__main__":
    B, H, Lq, Lk, E = 2, 4, 8, 8, 32

    key = jax.random.PRNGKey(0)
    kq, kk, kv = jax.random.split(key, 3)
    q = jax.random.normal(kq, (B, H, Lq, E), jnp.float32)
    k = jax.random.normal(kk, (B, H, Lk, E), jnp.float32)
    v = jax.random.normal(kv, (B, H, Lk, E), jnp.float32)

    # head-shared mask [B, 1, Lq, Lk]: causal + last-two-keys padding
    causal = jnp.triu(jnp.ones((Lq, Lk), jnp.bool_), k=1)
    pad = jnp.zeros((B, Lk), jnp.bool_).at[:, -2:].set(True)
    attn_mask = causal[None, None, :, :] | pad[:, None, None, :]

    out, attn = scaled_dot_product_attention(q, k, v, attn_mask)
    jax.block_until_ready(out)
    jax.block_until_ready(attn)

    # pure-JAX reference check (loose tol: kernel uses EUP approx reciprocal)
    s_ref = jnp.einsum("bhqd,bhkd->bhqk", q, k) * (1.0 / math.sqrt(float(E)))
    s_ref = jnp.where(attn_mask, _NEG_INF, s_ref)
    p_ref = jax.nn.softmax(s_ref, axis=-1)
    o_ref = jnp.einsum("bhqk,bhkd->bhqd", p_ref, v)

    assert out.shape == (B, H, Lq, E)
    assert attn.shape == (B, H, Lq, Lk)
    err_o = float(jnp.max(jnp.abs(out - o_ref)))
    err_a = float(jnp.max(jnp.abs(attn - p_ref)))
    assert err_o < 2e-2 and err_a < 2e-2, (err_o, err_a)

    # also exercise the attn_mask=None path
    out2, attn2 = scaled_dot_product_attention(q, k, v, None)
    jax.block_until_ready(out2)
    jax.block_until_ready(attn2)
    assert out2.shape == (B, H, Lq, E) and attn2.shape == (B, H, Lq, Lk)
    p2_ref = jax.nn.softmax(
        jnp.einsum("bhqd,bhkd->bhqk", q, k) * (1.0 / math.sqrt(float(E))), axis=-1)
    o2_ref = jnp.einsum("bhqk,bhkd->bhqd", p2_ref, v)
    assert float(jnp.max(jnp.abs(out2 - o2_ref))) < 2e-2
    assert float(jnp.max(jnp.abs(attn2 - p2_ref))) < 2e-2

    print("KERNEL_OK")
</pallas_src>

<mosaic_0001>
module attributes {stable_mosaic.version = 11 : i64} {
  func.func @_sdpa_kernel(%arg0: i32, %arg1: memref<8x8x32xf32, #tpu.memory_space<vmem>>, %arg2: memref<8x8x32xf32, #tpu.memory_space<vmem>>, %arg3: memref<8x8x32xf32, #tpu.memory_space<vmem>>, %arg4: memref<2x8x8xf32, #tpu.memory_space<vmem>>, %arg5: memref<8x8x32xf32, #tpu.memory_space<vmem>>, %arg6: memref<8x8x8xf32, #tpu.memory_space<vmem>>) attributes {dimension_semantics = [#tpu.dimension_semantics<parallel>], iteration_bounds = array<i64: 1>, scalar_prefetch = 0 : i64, scratch_operands = 0 : i64, tpu.core_type = #tpu.core_type<tc>, window_params = [{transform_indices = @transform_0, window_bounds = array<i64: 8, 8, 32>}, {transform_indices = @transform_1, window_bounds = array<i64: 8, 8, 32>}, {transform_indices = @transform_2, window_bounds = array<i64: 8, 8, 32>}, {transform_indices = @transform_3, window_bounds = array<i64: 2, 8, 8>}, {transform_indices = @transform_4, window_bounds = array<i64: 8, 8, 32>}, {transform_indices = @transform_5, window_bounds = array<i64: 8, 8, 8>}]} {
    %c0 = arith.constant 0 : index
    %c0_0 = arith.constant 0 : index
    %c0_1 = arith.constant 0 : index
    %0 = vector.load %arg1[%c0, %c0_0, %c0_1] : memref<8x8x32xf32, #tpu.memory_space<vmem>>, vector<8x8x32xf32>
    %c0_2 = arith.constant 0 : index
    %c0_3 = arith.constant 0 : index
    %c0_4 = arith.constant 0 : index
    %1 = vector.load %arg2[%c0_2, %c0_3, %c0_4] : memref<8x8x32xf32, #tpu.memory_space<vmem>>, vector<8x8x32xf32>
    %c0_5 = arith.constant 0 : index
    %c0_6 = arith.constant 0 : index
    %c0_7 = arith.constant 0 : index
    %2 = vector.load %arg3[%c0_5, %c0_6, %c0_7] : memref<8x8x32xf32, #tpu.memory_space<vmem>>, vector<8x8x32xf32>
    "tpu.trace_start"() <{level = 10 : i32, message = "bqd,bkd->bqk"}> : () -> ()
    %cst = arith.constant dense<0.000000e+00> : vector<8x8x8xf32>
    %3 = tpu.matmul %0, %1, %cst {dimension_numbers = #tpu.dot_dimension_numbers<[2], [2], [1], [1], [0, 0, 0, 1, 1, 1], [0], [0]>} : vector<8x8x32xf32>, vector<8x8x32xf32>, vector<8x8x8xf32> -> vector<8x8x8xf32>
    "tpu.trace_stop"() : () -> ()
    %cst_8 = arith.constant 0.176776692 : f32
    %4 = vector.broadcast %cst_8 : f32 to vector<8x8x8xf32>
    %5 = arith.mulf %3, %4 : vector<8x8x8xf32>
    %c0_9 = arith.constant 0 : index
    %c0_10 = arith.constant 0 : index
    %c0_11 = arith.constant 0 : index
    %6 = vector.load %arg4[%c0_9, %c0_10, %c0_11] : memref<2x8x8xf32, #tpu.memory_space<vmem>>, vector<2x8x8xf32>
    %7 = vector.shape_cast %5 : vector<8x8x8xf32> to vector<2x4x8x8xf32>
    %8 = vector.shape_cast %6 : vector<2x8x8xf32> to vector<2x1x8x8xf32>
    %cst_12 = arith.constant 0.000000e+00 : f32
    %9 = vector.broadcast %cst_12 : f32 to vector<2x1x8x8xf32>
    %10 = arith.cmpf ogt, %8, %9 : vector<2x1x8x8xf32>
    %cst_13 = arith.constant -1.000000e+09 : f32
    %11 = vector.shape_cast %10 : vector<2x1x8x8xi1> to vector<2x1x8x8xi1>
    %12 = vector.broadcast %11 : vector<2x1x8x8xi1> to vector<2x4x8x8xi1>
    %13 = vector.broadcast %cst_13 : f32 to vector<2x4x8x8xf32>
    %14 = arith.select %12, %13, %7 : vector<2x4x8x8xi1>, vector<2x4x8x8xf32>
    %15 = vector.shape_cast %14 : vector<2x4x8x8xf32> to vector<8x8x8xf32>
    %cst_14 = arith.constant dense<0xFF800000> : vector<8x8xf32>
    %16 = vector.multi_reduction <maximumf>, %15, %cst_14 [2] : vector<8x8x8xf32> to vector<8x8xf32>
    %17 = vector.shape_cast %16 : vector<8x8xf32> to vector<8x8x1xf32>
    %18 = vector.broadcast %17 : vector<8x8x1xf32> to vector<8x8x8xf32>
    %19 = arith.subf %15, %18 : vector<8x8x8xf32>
    %20 = math.exp %19 : vector<8x8x8xf32>
    %cst_15 = arith.constant dense<0.000000e+00> : vector<8x8xf32>
    %21 = vector.multi_reduction <add>, %20, %cst_15 [2] : vector<8x8x8xf32> to vector<8x8xf32>
    %22 = vector.shape_cast %21 : vector<8x8xf32> to vector<8x8x1xf32>
    %23 = tpu.reciprocal %22 {approx = true} : vector<8x8x1xf32> -> vector<8x8x1xf32>
    %24 = vector.broadcast %23 : vector<8x8x1xf32> to vector<8x8x8xf32>
    %25 = arith.mulf %20, %24 : vector<8x8x8xf32>
    %c0_16 = arith.constant 0 : index
    %c0_17 = arith.constant 0 : index
    %c0_18 = arith.constant 0 : index
    %26 = vector.load %arg6[%c0_16, %c0_17, %c0_18] : memref<8x8x8xf32, #tpu.memory_space<vmem>>, vector<8x8x8xf32>
    tpu.vector_store %arg6[%c0_16, %c0_17, %c0_18], %25 {strides = array<i32>} : memref<8x8x8xf32, #tpu.memory_space<vmem>>, vector<8x8x8xf32>,
    "tpu.trace_start"() <{level = 10 : i32, message = "bqk,bkd->bqd"}> : () -> ()
    %cst_19 = arith.constant dense<0.000000e+00> : vector<8x8x32xf32>
    %27 = tpu.matmul %25, %2, %cst_19 {dimension_numbers = #tpu.dot_dimension_numbers<[2], [1], [1], [2], [0, 0, 0, 1, 1, 2], [0], [0]>} : vector<8x8x8xf32>, vector<8x8x32xf32>, vector<8x8x32xf32> -> vector<8x8x32xf32>
    "tpu.trace_stop"() : () -> ()
    %c0_20 = arith.constant 0 : index
    %c0_21 = arith.constant 0 : index
    %c0_22 = arith.constant 0 : index
    %28 = vector.load %arg5[%c0_20, %c0_21, %c0_22] : memref<8x8x32xf32, #tpu.memory_space<vmem>>, vector<8x8x32xf32>
    tpu.vector_store %arg5[%c0_20, %c0_21, %c0_22], %27 {strides = array<i32>} : memref<8x8x32xf32, #tpu.memory_space<vmem>>, vector<8x8x32xf32>,
    return
  }
  func.func @transform_0(%arg0: i32) -> (i32, i32, i32) {
    %c0_i32 = arith.constant 0 : i32
    %c0_i32_0 = arith.constant 0 : i32
    %c0_i32_1 = arith.constant 0 : i32
    return %arg0, %c0_i32, %c0_i32_0 : i32, i32, i32
  }
  func.func @transform_1(%arg0: i32) -> (i32, i32, i32) {
    %c0_i32 = arith.constant 0 : i32
    %c0_i32_0 = arith.constant 0 : i32
    %c0_i32_1 = arith.constant 0 : i32
    return %arg0, %c0_i32, %c0_i32_0 : i32, i32, i32
  }
  func.func @transform_2(%arg0: i32) -> (i32, i32, i32) {
    %c0_i32 = arith.constant 0 : i32
    %c0_i32_0 = arith.constant 0 : i32
    %c0_i32_1 = arith.constant 0 : i32
    return %arg0, %c0_i32, %c0_i32_0 : i32, i32, i32
  }
  func.func @transform_3(%arg0: i32) -> (i32, i32, i32) {
    %c0_i32 = arith.constant 0 : i32
    %c0_i32_0 = arith.constant 0 : i32
    %c0_i32_1 = arith.constant 0 : i32
    return %arg0, %c0_i32, %c0_i32_0 : i32, i32, i32
  }
  func.func @transform_4(%arg0: i32) -> (i32, i32, i32) {
    %c0_i32 = arith.constant 0 : i32
    %c0_i32_0 = arith.constant 0 : i32
    %c0_i32_1 = arith.constant 0 : i32
    return %arg0, %c0_i32, %c0_i32_0 : i32, i32, i32
  }
  func.func @transform_5(%arg0: i32) -> (i32, i32, i32) {
    %c0_i32 = arith.constant 0 : i32
    %c0_i32_0 = arith.constant 0 : i32
    %c0_i32_1 = arith.constant 0 : i32
    return %arg0, %c0_i32, %c0_i32_0 : i32, i32, i32
  }
}

</mosaic_0001>

<bundles_post_ra>
// kernel: tpu_custom_call.1
= control target key start
LH: loop header
LB: loop body
LE: loop exit
PB: predicated region body
PF: predicated region fallthrough
CT: control target
= control target key end

     0   :  { %11 = vsyncpa [#allocation3], 0  ;;  %s2045_s0 = inlined_call_operand.hbm [shape: f32[8,8,32], index: 0, kind: input, shape index: {}]   ;;  %s2046_s1 = inlined_call_operand.hbm [shape: f32[8,8,32], index: 1, kind: input, shape index: {}]   ;;  %s2047_s2 = inlined_call_operand.hbm [shape: f32[8,8,32], index: 2, kind: input, shape index: {}]   ;;  %s2048_s3 = inlined_call_operand.hbm [shape: f32[2,8,8], index: 3, kind: input, shape index: {}]   ;;  %s2049_s4 = inlined_call_operand.hbm [shape: f32[8,8,32], index: 4, kind: output, shape index: {0}]   ;;  %s2050_s5 = inlined_call_operand.hbm [shape: f32[8,8,8], index: 5, kind: output, shape index: {1}]  }
   0x1   :  { %12 = vsyncpa [#allocation6], 0 }
   0x2   :  { %13 = vsyncpa [#allocation9], 0 }
   0x3   :  { %14 = vsyncpa [#allocation4], 0 }
   0x4   :  { %15 = vsyncpa [#allocation12], 0  ;;  %s1777_s18 = smov [#allocation5]   ;;  %s1778_s20 = smov [#allocation2]  }
   0x5   :  { %s33_s19 = sshll.u32 %s1777_s18, 4  ;;  %s21_s21 = sshll.u32 %s1778_s20, 4  ;;  %s34_s19 = int_to_ptr.vmem [resolvable:$true] %s33_s19  ;;  %s1817_s21 = int_to_ptr.vmem [resolvable:$true] %s21_s21 }
   0x6   :  { %s1635_s24 = scalar_lea.hbm %s2046_s1, 1024 }
   0x7   :  { %p1636_p0 = scmp.ne.s32.totalorder %s2046_s1, %s1635_s24  ;;  %p1639_p1 = scmp.lt.u32.totalorder %s1635_s24, %s2046_s1 }
   0x9   :  { %p1641_p2 = pnand %p1639_p1, %p1636_p0 }
   0xb   :  { %1644 = shalt.err (!%p1641_p2)
}
   0xc   :  { %s1645_s29 = scalar_lea.vmem %s34_s19, 1024  ;;  %p1650_p4 = scmp.lt.s32.totalorder %s34_s19, %s34_s19 }
   0xd   :  { %p1646_p3 = scmp.ne.s32.totalorder %s34_s19, %s1645_s29  ;;  %p1651_p5 = scmp.lt.s32.totalorder %s1645_s29, %s1645_s29 }
   0xf   :  { %p1652_p6 = por %p1651_p5, %p1650_p4 }
  0x11   :  { %p1653_p7 = pnand %p1652_p6, %p1646_p3 }
  0x13   :  { %1656 = shalt.err (!%p1653_p7)
}
  0x14   :  { %s1779_s30 = smov 128   ;;  %s1780_s6 = smov 8  }
  0x15   :  { %39 = dma.hbm_to_vmem [thread:$0]  %s2046_s1, 1024, %s34_s19, [#allocation6], %s1779_s30, %s1779_s30, %s1780_s6  }
  0x16   :  { %s1657_s11 = scalar_lea.hbm %s2045_s0, 1024 }
  0x17   :  { %p1658_p8 = scmp.ne.s32.totalorder %s2045_s0, %s1657_s11  ;;  %p1661_p9 = scmp.lt.u32.totalorder %s1657_s11, %s2045_s0 }
  0x19   :  { %p1663_p10 = pnand %p1661_p9, %p1658_p8 }
  0x1b   :  { %1666 = shalt.err (!%p1663_p10)
}
  0x1c   :  { %s1667_s16 = scalar_lea.vmem %s1817_s21, 1024  ;;  %p1672_p12 = scmp.lt.s32.totalorder %s1817_s21, %s1817_s21 }
  0x1d   :  { %p1668_p11 = scmp.ne.s32.totalorder %s1817_s21, %s1667_s16  ;;  %p1673_p13 = scmp.lt.s32.totalorder %s1667_s16, %s1667_s16 }
  0x1f   :  { %p1674_p0 = por %p1673_p13, %p1672_p12 }
  0x21   :  { %p1675_p1 = pnand %p1674_p0, %p1668_p11 }
  0x23   :  { %1678 = shalt.err (!%p1675_p1)
}
  0x24   :  { %27 = dma.hbm_to_vmem [thread:$0]  %s2045_s0, 1024, %s1817_s21, [#allocation3], %s1779_s30, %s1779_s30, %s1780_s6  }
  0x25   :  { %s1781_s18 = smov [#allocation7]   ;;  %s1782_s20 = smov [#allocation8]  }
  0x26   :  { %s45_s19 = sshll.u32 %s1781_s18, 4  ;;  %s57_s22 = sshll.u32 %s1782_s20, 4  ;;  %s46_s19 = int_to_ptr.vmem [resolvable:$true] %s45_s19  ;;  %s1854_s22 = int_to_ptr.vmem [resolvable:$true] %s57_s22 }
  0x27   :  { %s1679_s25 = scalar_lea.hbm %s2047_s2, 1024 }
  0x28   :  { %p1680_p2 = scmp.ne.s32.totalorder %s2047_s2, %s1679_s25  ;;  %p1683_p3 = scmp.lt.u32.totalorder %s1679_s25, %s2047_s2 }
  0x2a   :  { %p1685_p4 = pnand %p1683_p3, %p1680_p2 }
  0x2c   :  { %1688 = shalt.err (!%p1685_p4)
}
  0x2d   :  { %s1689_s0 = scalar_lea.vmem %s46_s19, 1024  ;;  %p1694_p6 = scmp.lt.s32.totalorder %s46_s19, %s46_s19 }
  0x2e   :  { %p1690_p5 = scmp.ne.s32.totalorder %s46_s19, %s1689_s0  ;;  %p1695_p7 = scmp.lt.s32.totalorder %s1689_s0, %s1689_s0 }
  0x30   :  { %p1696_p8 = por %p1695_p7, %p1694_p6 }
  0x32   :  { %p1697_p9 = pnand %p1696_p8, %p1690_p5 }
  0x34   :  { %1700 = shalt.err (!%p1697_p9)
}
  0x35   :  { %51 = dma.hbm_to_vmem [thread:$0]  %s2047_s2, 1024, %s46_s19, [#allocation6], %s1779_s30, %s1779_s30, %s1780_s6  }
  0x36   :  { %s1701_s10 = scalar_lea.hbm %s2048_s3, 256 }
  0x37   :  { %p1702_p10 = scmp.ne.s32.totalorder %s2048_s3, %s1701_s10  ;;  %p1705_p11 = scmp.lt.u32.totalorder %s1701_s10, %s2048_s3 }
  0x39   :  { %p1707_p12 = pnand %p1705_p11, %p1702_p10 }
  0x3b   :  { %1710 = shalt.err (!%p1707_p12)
}
  0x3c   :  { %s1711_s15 = scalar_lea.vmem %s1854_s22, 256  ;;  %p1716_p0 = scmp.lt.s32.totalorder %s1854_s22, %s1854_s22 }
  0x3d   :  { %p1712_p13 = scmp.ne.s32.totalorder %s1854_s22, %s1711_s15  ;;  %p1717_p1 = scmp.lt.s32.totalorder %s1711_s15, %s1711_s15 }
  0x3f   :  { %p1718_p2 = por %p1717_p1, %p1716_p0 }
  0x41   :  { %p1719_p3 = pnand %p1718_p2, %p1712_p13 }
  0x43   :  { %1722 = shalt.err (!%p1719_p3)
}
  0x44   :  { %63 = dma.hbm_to_vmem [thread:$0]  %s2048_s3, 256, %s1854_s22, [#allocation9], %s1779_s30, %s1779_s30, %s1780_s6  }
  0x45   :  { %1767 = dma.done.wait [#allocation3], 1024  }
  0x46   :  { %1768 = vsyncadd [#allocation3], 4294966272 }
  0x47   :  { %1769 = dma.done.wait [#allocation6], 2048  }
  0x48   :  { %1770 = vsyncadd [#allocation6], 4294965248 }
  0x49   :  { %1771 = dma.done.wait [#allocation9], 256  }
  0x4a   :  { %1772 = vsyncadd [#allocation9], 4294967040  ;;  %v1783_v0 = vmov 0.0   ;;  %vm1784_vm0 = vmmov 0   ;;  %vm100_vm1 = vcmask 261120   ;;  %v84_v1 = vld [vmem:[#allocation5] sm:$0xff] }
  0x4b   :  { %1513 = vmatprep.subr.mxu0 %v1783_v0  ;;  %1515 = vmatprep.mubr.msk.f32.mxu0 %vm1784_vm0, %v1783_v0  ;;  %v85_v2 = vld [vmem:[#allocation5 + $0x8] sm:$0xff]  ;;  %v76_v3 = vld [vmem:[#allocation2] sm:$0xff]  ;;  %v86_v5 = vld [vmem:[#allocation5 + $0x10] sm:$0xff]  ;;  %vm733_vm3 = vcmask 64512   ;;  %s1785_s3 = smov [#allocation11]  }
  0x4c   :  { %1518 = vmatprep.subr.mxu1 %v1783_v0  ;;  %1520 = vmatprep.mubr.msk.f32.mxu1 %vm1784_vm0, %v1783_v0  ;;  %v77_v4 = vld [vmem:[#allocation2 + $0x8] sm:$0xff]  ;;  %v87_v6 = vld [vmem:[#allocation5 + $0x18] sm:$0xff]  ;;  %v78_v7 = vld [vmem:[#allocation2 + $0x10] sm:$0xff]  ;;  %s1439_s1 = sshll.u32 %s1785_s3, 4  ;;  %s1440_s1 = int_to_ptr.vmem [resolvable:$true] %s1439_s1 }
  0x4d   :  { %1514 = vmatpush3.xpose.msk.msra.mxu0 %vm100_vm1, %v84_v1  ;;  %1519 = vmatpush3.xpose.msk.msra.mxu1 %vm100_vm1, %v85_v2  ;;  %v88_v8 = vld [vmem:[#allocation5 + $0x20] sm:$0xff]  ;;  %v79_v9 = vld [vmem:[#allocation2 + $0x18] sm:$0xff]  ;;  %v89_v10 = vld [vmem:[#allocation5 + $0x28] sm:$0xff]  ;;  %s1723_s17 = scalar_lea.vmem %s1440_s1, 1024  ;;  %p1728_p5 = scmp.lt.s32.totalorder %s1440_s1, %s1440_s1 }
  0x4e   :  { %1523 = vmatprep.subr.mxu0 %v1783_v0  ;;  %1528 = vmatprep.subr.mxu1 %v1783_v0  ;;  %v80_v11 = vld [vmem:[#allocation2 + $0x20] sm:$0xff]  ;;  %v90_v12 = vld [vmem:[#allocation5 + $0x30] sm:$0xff]  ;;  %v81_v13 = vld [vmem:[#allocation2 + $0x28] sm:$0xff]  ;;  %p1724_p4 = scmp.ne.s32.totalorder %s1440_s1, %s1723_s17  ;;  %p1729_p6 = scmp.lt.s32.totalorder %s1723_s17, %s1723_s17 }
  0x4f   :  { %v91_v14 = vld [vmem:[#allocation5 + $0x38] sm:$0xff]  ;;  %v82_v15 = vld [vmem:[#allocation2 + $0x30] sm:$0xff]  ;;  %v717_v17 = vld [vmem:[#allocation8] sm:$0xff] }
  0x50   :  { %1516 = vmatmul.mubr.msk.f32.vlgmr.msra.gmra.mrb[0].mxu0 %vm100_vm1, %v76_v3  ;;  %1521 = vmatmul.mubr.msk.f32.vlgmr.msra.gmra.mrb[0].mxu1 %vm100_vm1, %v77_v4  ;;  %v83_v16 = vld [vmem:[#allocation2 + $0x38] sm:$0xff]  ;;  %vm719_vm2 = vcmp.gt.f32.partialorder %v717_v17, 0.0  ;;  %v718_v30 = vld [vmem:[#allocation8 + $0x8] sm:$0xff]  ;;  %p1730_p7 = por %p1729_p6, %p1728_p5 }
  0x51   :  { %1524 = vmatpush3.xpose.msk.msra.mxu0 %vm100_vm1, %v86_v5  ;;  %1525 = vmatprep.mubr.msk.f32.mxu0 %vm1784_vm0, %v1783_v0  ;;  %vm720_vm4 = vcmp.gt.f32.partialorder %v718_v30, 0.0 }
  0x52   :  { %1533 = vmatprep.subr.mxu0 %v1783_v0  ;;  %1529 = vmatpush3.xpose.msk.msra.mxu1 %vm100_vm1, %v87_v6  ;;  %p1731_p8 = pnand %p1730_p7, %p1724_p4 }
  0x53   :  { %1530 = vmatprep.mubr.msk.f32.mxu1 %vm1784_vm0, %v1783_v0  ;;  %1538 = vmatprep.subr.mxu1 %v1783_v0 }
  0x54   :  { %1526 = vmatmul.mubr.msk.f32.vlgmr.msra.gmra.mrb[2].mxu0 %vm100_vm1, %v78_v7 }
  0x55   :  { %1534 = vmatpush3.xpose.msk.msra.mxu0 %vm100_vm1, %v88_v8  ;;  %1535 = vmatprep.mubr.msk.f32.mxu0 %vm1784_vm0, %v1783_v0 }
  0x56   :  { %1531 = vmatmul.mubr.msk.f32.vlgmr.msra.gmra.mrb[2].mxu1 %vm100_vm1, %v79_v9  ;;  %1543 = vmatprep.subr.mxu0 %v1783_v0 }
  0x57   :  { %1539 = vmatpush3.xpose.msk.msra.mxu1 %vm100_vm1, %v89_v10  ;;  %1540 = vmatprep.mubr.msk.f32.mxu1 %vm1784_vm0, %v1783_v0 }
  0x58   :  { %1536 = vmatmul.mubr.msk.f32.vlgmr.msra.gmra.mrb[4].mxu0 %vm100_vm1, %v80_v11  ;;  %1548 = vmatprep.subr.mxu1 %v1783_v0 }
  0x59   :  { %1544 = vmatpush3.xpose.msk.msra.mxu0 %vm100_vm1, %v90_v12  ;;  %1545 = vmatprep.mubr.msk.f32.mxu0 %vm1784_vm0, %v1783_v0 }
  0x5a   :  { %1541 = vmatmul.mubr.msk.f32.vlgmr.msra.gmra.mrb[4].mxu1 %vm100_vm1, %v81_v13  ;;  %1553 = vmatprep.subr.mxu0 %v1783_v0 }
  0x5b   :  { %1549 = vmatpush3.xpose.msk.msra.mxu1 %vm100_vm1, %v91_v14  ;;  %1550 = vmatprep.mubr.msk.f32.mxu1 %vm1784_vm0, %v1783_v0 }
  0x5c   :  { %1546 = vmatmul.mubr.msk.f32.vlgmr.msra.gmra.mrb[6].mxu0 %vm100_vm1, %v82_v15  ;;  %1558 = vmatprep.subr.mxu1 %v1783_v0 }
  0x5d   :  { %1555 = vmatprep.mubr.msk.f32.mxu0 %vm1784_vm0, %v1783_v0 }
  0x5e   :  { %1551 = vmatmul.mubr.msk.f32.vlgmr.msra.gmra.mrb[6].mxu1 %vm100_vm1, %v83_v16 }
  0x5f   :  { %1560 = vmatprep.mubr.msk.f32.mxu1 %vm1784_vm0, %v1783_v0 }
 0x123   :  { %v173_v18 = vpop.f32.mrb[0].mxu0  ;;  %v249_v19 = vpop.f32.mrb[0].mxu1 }
 0x124   :  { %v709_v20 = vmul.f32 0.17677669, %v173_v18  ;;  %v1517_v21 = vpop.f32.mrb[1].mxu0  ;;  %v710_v22 = vmul.f32 0.17677669, %v249_v19  ;;  %v1522_v23 = vpop.f32.mrb[1].mxu1 }
 0x126   :  { %v725_v24 = vsel %vm719_vm2, -1e+09, %v709_v20  ;;  %v726_v25 = vsel %vm719_vm2, -1e+09, %v710_v22 }
 0x127   :  { %v325_v26 = vpop.f32.mrb[2].mxu0  ;;  %v734_v27 = vsel %vm733_vm3, %v725_v24, -inf  ;;  %v737_v32 = vsel %vm733_vm3, %v726_v25, -inf }
 0x128   :  { %v711_v28 = vmul.f32 0.17677669, %v325_v26  ;;  %735 = vmax.xlane.f32.xlu0 %v734_v27  ;;  %v1527_v29 = vpop.f32.mrb[3].mxu0 }
 0x129   :  { %v401_v31 = vpop.f32.mrb[2].mxu1 }
 0x12a   :  { %v712_v33 = vmul.f32 0.17677669, %v401_v31  ;;  %v1532_v34 = vpop.f32.mrb[3].mxu1  ;;  %v727_v35 = vsel %vm719_vm2, -1e+09, %v711_v28 }
 0x12b   :  { %v477_v36 = vpop.f32.mrb[4].mxu0  ;;  %v740_v37 = vsel %vm733_vm3, %v727_v35, -inf }
 0x12c   :  { %v713_v38 = vmul.f32 0.17677669, %v477_v36  ;;  %738 = vmax.xlane.f32.xlu0 %v737_v32  ;;  %741 = vmax.xlane.f32.xlu1 %v740_v37  ;;  %v1537_v39 = vpop.f32.mrb[5].mxu0  ;;  %v728_v40 = vsel %vm719_vm2, -1e+09, %v712_v33  ;;  %v92_v36 = vld [vmem:[#allocation7] sm:$0xff] }
 0x12d   :  { %v553_v41 = vpop.f32.mrb[4].mxu1  ;;  %v743_v42 = vsel %vm733_vm3, %v728_v40, -inf  ;;  %1554 = vmatpush3.msra.mxu0 %v92_v36  ;;  %v93_v37 = vld [vmem:[#allocation7 + $0x8] sm:$0xff] }
 0x12e   :  { %v714_v43 = vmul.f32 0.17677669, %v553_v41  ;;  %v1542_v44 = vpop.f32.mrb[5].mxu1  ;;  %v729_v45 = vsel %vm720_vm4, -1e+09, %v713_v38  ;;  %1563 = vmatprep.subr.mxu0 %v1783_v0  ;;  %1559 = vmatpush3.msra.mxu1 %v93_v37 }
 0x12f   :  { %v629_v46 = vpop.f32.mrb[6].mxu0  ;;  %v746_v47 = vsel %vm733_vm3, %v729_v45, -inf  ;;  %1568 = vmatprep.subr.mxu1 %v1783_v0 }
 0x130   :  { %v715_v48 = vmul.f32 0.17677669, %v629_v46  ;;  %744 = vmax.xlane.f32.xlu1 %v743_v42  ;;  %747 = vmax.xlane.f32.xlu0 %v746_v47  ;;  %v730_v49 = vsel %vm720_vm4, -1e+09, %v714_v43  ;;  %v1547_v50 = vpop.f32.mrb[7].mxu0  ;;  %v94_v46 = vld [vmem:[#allocation7 + $0x10] sm:$0xff] }
 0x131   :  { %v705_v51 = vpop.f32.mrb[6].mxu1  ;;  %v749_v52 = vsel %vm733_vm3, %v730_v49, -inf }
 0x132   :  { %v716_v53 = vmul.f32 0.17677669, %v705_v51  ;;  %v1552_v54 = vpop.f32.mrb[7].mxu1  ;;  %v731_v55 = vsel %vm720_vm4, -1e+09, %v715_v48 }
 0x133   :  { %v752_v56 = vsel %vm733_vm3, %v731_v55, -inf  ;;  %v96_v54 = vld [vmem:[#allocation7 + $0x20] sm:$0xff] }
 0x134   :  { %750 = vmax.xlane.f32.xlu1 %v749_v52  ;;  %753 = vmax.xlane.f32.xlu0 %v752_v56  ;;  %v732_v57 = vsel %vm720_vm4, -1e+09, %v716_v53  ;;  %v95_v52 = vld [vmem:[#allocation7 + $0x18] sm:$0xff] }
 0x135   :  { %v755_v58 = vsel %vm733_vm3, %v732_v57, -inf }
 0x138   :  { %756 = vmax.xlane.f32.xlu1 %v755_v58  ;;  %v97_v58 = vld [vmem:[#allocation7 + $0x28] sm:$0xff] }
 0x1b5   :  { %v736_v59 = vpop.xlane.xlu0 %735 }
 0x1b6   :  { %v758_v60 = vsub.f32 %v725_v24, %v736_v59 }
 0x1b8   :  { %v766_v61 = vmul.f32 1.442695, %v758_v60  ;;  %v98_v60 = vld [vmem:[#allocation7 + $0x30] sm:$0xff] }
 0x1b9   :  { %v739_v62 = vpop.xlane.xlu0 %738  ;;  %v742_v63 = vpop.xlane.xlu1 %741 }
 0x1ba   :  { %1603 = vpow2.f32 %v766_v61  ;;  %v759_v1 = vsub.f32 %v726_v25, %v739_v62  ;;  %v760_v2 = vsub.f32 %v727_v35, %v742_v63 }
 0x1bc   :  { %v768_v3 = vmul.f32 1.442695, %v759_v1  ;;  %v770_v4 = vmul.f32 1.442695, %v760_v2  ;;  %v99_v1 = vld [vmem:[#allocation7 + $0x38] sm:$0xff] }
 0x1bd   :  { %v745_v5 = vpop.xlane.xlu1 %744  ;;  %v748_v6 = vpop.xlane.xlu0 %747 }
 0x1be   :  { %1605 = vpow2.f32 %v768_v3  ;;  %v761_v7 = vsub.f32 %v728_v40, %v745_v5  ;;  %v762_v8 = vsub.f32 %v729_v45, %v748_v6 }
 0x1bf   :  { %1607 = vpow2.f32 %v770_v4 }
 0x1c0   :  { %v772_v9 = vmul.f32 1.442695, %v761_v7  ;;  %v774_v10 = vmul.f32 1.442695, %v762_v8 }
 0x1c1   :  { %v751_v11 = vpop.xlane.xlu1 %750  ;;  %v754_v12 = vpop.xlane.xlu0 %753 }
 0x1c2   :  { %1609 = vpow2.f32 %v772_v9  ;;  %v763_v13 = vsub.f32 %v730_v49, %v751_v11  ;;  %v764_v14 = vsub.f32 %v731_v55, %v754_v12 }
 0x1c3   :  { %1611 = vpow2.f32 %v774_v10 }
 0x1c4   :  { %v1604_v15 = vpop.eup %1603  ;;  %v776_v16 = vmul.f32 1.442695, %v763_v13  ;;  %v778_v17 = vmul.f32 1.442695, %v764_v14 }
 0x1c5   :  { %v757_v18 = vpop.xlane.xlu1 %756  ;;  %v782_v19 = vsel %vm733_vm3, %v1604_v15, 0.0 }
 0x1c6   :  { %1613 = vpow2.f32 %v776_v16  ;;  %v765_v20 = vsub.f32 %v732_v57, %v757_v18  ;;  %783 = vadd.xlane.f32.xlu0 %v782_v19 }
 0x1c7   :  { %1615 = vpow2.f32 %v778_v17 }
 0x1c8   :  { %v1606_v21 = vpop.eup %1605  ;;  %v780_v22 = vmul.f32 1.442695, %v765_v20 }
 0x1c9   :  { %v1608_v23 = vpop.eup %1607  ;;  %v785_v24 = vsel %vm733_vm3, %v1606_v21, 0.0 }
 0x1ca   :  { %1617 = vpow2.f32 %v780_v22  ;;  %786 = vadd.xlane.f32.xlu1 %v785_v24  ;;  %v788_v25 = vsel %vm733_vm3, %v1608_v23, 0.0 }
 0x1cb   :  { %789 = vadd.xlane.f32.xlu0 %v788_v25 }
 0x1cc   :  { %v1610_v26 = vpop.eup %1609 }
 0x1cd   :  { %v1612_v27 = vpop.eup %1611  ;;  %v791_v28 = vsel %vm733_vm3, %v1610_v26, 0.0 }
 0x1ce   :  { %792 = vadd.xlane.f32.xlu1 %v791_v28  ;;  %v794_v29 = vsel %vm733_vm3, %v1612_v27, 0.0 }
 0x1cf   :  { %795 = vadd.xlane.f32.xlu0 %v794_v29 }
 0x1d0   :  { %v1958_v30 = vpop.eup %1613 }
 0x1d1   :  { %v1960_v31 = vpop.eup %1615  ;;  %v797_v32 = vsel %vm733_vm3, %v1958_v30, 0.0 }
 0x1d2   :  { %798 = vadd.xlane.f32.xlu1 %v797_v32  ;;  %v800_v33 = vsel %vm733_vm3, %v1960_v31, 0.0 }
 0x1d3   :  { %801 = vadd.xlane.f32.xlu0 %v800_v33 }
 0x1d4   :  { %v1966_v34 = vpop.eup %1617 }
 0x1d5   :  { %v803_v35 = vsel %vm733_vm3, %v1966_v34, 0.0 }
 0x1d6   :  { %804 = vadd.xlane.f32.xlu1 %v803_v35 }
 0x253   :  { %v784_v38 = vpop.xlane.xlu0 %783 }
 0x254   :  { %1619 = vrcp.f32 %v784_v38 }
 0x257   :  { %v787_v39 = vpop.xlane.xlu1 %786 }
 0x258   :  { %1621 = vrcp.f32 %v787_v39  ;;  %v790_v40 = vpop.xlane.xlu0 %789 }
 0x259   :  { %1623 = vrcp.f32 %v790_v40 }
 0x25b   :  { %v793_v41 = vpop.xlane.xlu1 %792 }
 0x25c   :  { %1625 = vrcp.f32 %v793_v41  ;;  %v796_v42 = vpop.xlane.xlu0 %795 }
 0x25d   :  { %1627 = vrcp.f32 %v796_v42 }
 0x25e   :  { %v1620_v43 = vpop.eup %1619 }
 0x25f   :  { %v814_v44 = vmul.f32 %v1620_v43, %v1604_v15  ;;  %v799_v45 = vpop.xlane.xlu1 %798 }
 0x260   :  { %1629 = vrcp.f32 %v799_v45  ;;  %v802_v47 = vpop.xlane.xlu0 %801 }
 0x261   :  { %822 = vst.msk [vmem:[#allocation11] sm:$0xff] %vm733_vm3, %v814_v44  ;;  %1631 = vrcp.f32 %v802_v47  ;;  %1556 = vmatmul.mubr.msk.f32.vlgmr.msra.gmra.mrb[8].mxu0 %vm733_vm3, %v814_v44 }
 0x262   :  { %v1622_v48 = vpop.eup %1621  ;;  %1564 = vmatpush3.msra.mxu0 %v94_v46  ;;  %1565 = vmatprep.mubr.msk.f32.mxu0 %vm1784_vm0, %v1783_v0 }
 0x263   :  { %v1624_v49 = vpop.eup %1623  ;;  %v815_v50 = vmul.f32 %v1622_v48, %v1606_v21  ;;  %v805_v51 = vpop.xlane.xlu1 %804  ;;  %1573 = vmatprep.subr.mxu0 %v1783_v0 }
 0x264   :  { %v816_v53 = vmul.f32 %v1624_v49, %v1608_v23  ;;  %1633 = vrcp.f32 %v805_v51 }
 0x265   :  { %823 = vst.msk [vmem:[#allocation11 + $0x8] sm:$0xff] %vm733_vm3, %v815_v50  ;;  %1561 = vmatmul.mubr.msk.f32.vlgmr.msra.gmra.mrb[8].mxu1 %vm733_vm3, %v815_v50 }
 0x266   :  { %v1626_v55 = vpop.eup %1625  ;;  %824 = vst.msk [vmem:[#allocation11 + $0x10] sm:$0xff] %vm733_vm3, %v816_v53  ;;  %1566 = vmatmul.mubr.msk.f32.vlgmr.msra.gmra.mrb[10].mxu0 %vm733_vm3, %v816_v53  ;;  %1569 = vmatpush3.msra.mxu1 %v95_v52 }
 0x267   :  { %v1628_v56 = vpop.eup %1627  ;;  %v817_v57 = vmul.f32 %v1626_v55, %v1610_v26  ;;  %1570 = vmatprep.mubr.msk.f32.mxu1 %vm1784_vm0, %v1783_v0  ;;  %1574 = vmatpush3.msra.mxu0 %v96_v54 }
 0x268   :  { %v818_v59 = vmul.f32 %v1628_v56, %v1612_v27  ;;  %1575 = vmatprep.mubr.msk.f32.mxu0 %vm1784_vm0, %v1783_v0  ;;  %1578 = vmatprep.subr.mxu1 %v1783_v0 }
 0x269   :  { %825 = vst.msk [vmem:[#allocation11 + $0x18] sm:$0xff] %vm733_vm3, %v817_v57  ;;  %1571 = vmatmul.mubr.msk.f32.vlgmr.msra.gmra.mrb[10].mxu1 %vm733_vm3, %v817_v57  ;;  %1583 = vmatprep.subr.mxu0 %v1783_v0 }
 0x26a   :  { %v1630_v61 = vpop.eup %1629  ;;  %826 = vst.msk [vmem:[#allocation11 + $0x20] sm:$0xff] %vm733_vm3, %v818_v59  ;;  %1576 = vmatmul.mubr.msk.f32.vlgmr.msra.gmra.mrb[12].mxu0 %vm733_vm3, %v818_v59  ;;  %1579 = vmatpush3.msra.mxu1 %v97_v58 }
 0x26b   :  { %v1632_v62 = vpop.eup %1631  ;;  %v819_v63 = vmul.f32 %v1630_v61, %v1958_v30  ;;  %1580 = vmatprep.mubr.msk.f32.mxu1 %vm1784_vm0, %v1783_v0  ;;  %1584 = vmatpush3.msra.mxu0 %v98_v60 }
 0x26c   :  { %v820_v2 = vmul.f32 %v1632_v62, %v1960_v31  ;;  %1585 = vmatprep.mubr.msk.f32.mxu0 %vm1784_vm0, %v1783_v0  ;;  %1588 = vmatprep.subr.mxu1 %v1783_v0 }
 0x26d   :  { %827 = vst.msk [vmem:[#allocation11 + $0x28] sm:$0xff] %vm733_vm3, %v819_v63  ;;  %1581 = vmatmul.mubr.msk.f32.vlgmr.msra.gmra.mrb[12].mxu1 %vm733_vm3, %v819_v63 }
 0x26e   :  { %v1634_v3 = vpop.eup %1633  ;;  %828 = vst.msk [vmem:[#allocation11 + $0x30] sm:$0xff] %vm733_vm3, %v820_v2  ;;  %1586 = vmatmul.mubr.msk.f32.vlgmr.msra.gmra.mrb[14].mxu0 %vm733_vm3, %v820_v2  ;;  %1589 = vmatpush3.msra.mxu1 %v99_v1 }
 0x26f   :  { %v821_v4 = vmul.f32 %v1634_v3, %v1966_v34  ;;  %1590 = vmatprep.mubr.msk.f32.mxu1 %vm1784_vm0, %v1783_v0 }
 0x271   :  { %829 = vst.msk [vmem:[#allocation11 + $0x38] sm:$0xff] %vm733_vm3, %v821_v4  ;;  %1591 = vmatmul.mubr.msk.f32.vlgmr.msra.gmra.mrb[14].mxu1 %vm733_vm3, %v821_v4 }
 0x272   :  { %1734 = shalt.err (!%p1731_p8)
}
 0x273   :  { %s1735_s20 = scalar_lea.hbm %s2050_s5, 1024 }
 0x274   :  { %p1736_p9 = scmp.ne.s32.totalorder %s2050_s5, %s1735_s20  ;;  %p1739_p10 = scmp.lt.u32.totalorder %s1735_s20, %s2050_s5 }
 0x276   :  { %p1741_p11 = pnand %p1739_p10, %p1736_p9 }
 0x278   :  { %1744 = shalt.err (!%p1741_p11)
}
 0x279   :  { %1445 = dma.vmem_to_hbm [thread:$0]  %s1440_s1, 1024, %s2050_s5, [#allocation12], %s1779_s30, %s1779_s30, %s1780_s6  }
 0x27a   :  { %s1786_s5 = smov [#allocation10]  }
 0x27b   :  { %s1427_s28 = sshll.u32 %s1786_s5, 4  ;;  %s1428_s28 = int_to_ptr.vmem [resolvable:$true] %s1427_s28 }
 0x27c   :  { %s1745_s29 = scalar_lea.vmem %s1428_s28, 1024  ;;  %p1750_p13 = scmp.lt.s32.totalorder %s1428_s28, %s1428_s28 }
 0x27d   :  { %p1746_p12 = scmp.ne.s32.totalorder %s1428_s28, %s1745_s29  ;;  %p1751_p0 = scmp.lt.s32.totalorder %s1745_s29, %s1745_s29 }
 0x27f   :  { %p1752_p1 = por %p1751_p0, %p1750_p13 }
 0x281   :  { %p1753_p2 = pnand %p1752_p1, %p1746_p12 }
 0x334   :  { %v899_v0 = vpop.f32.mrb[8].mxu0 }
 0x335   :  { %1414 = vst.msk [vmem:[#allocation10] sm:$0xff] %vm100_vm1, %v899_v0  ;;  %v1557_v5 = vpop.f32.mrb[9].mxu0 }
 0x338   :  { %v972_v6 = vpop.f32.mrb[8].mxu1 }
 0x339   :  { %1415 = vst.msk [vmem:[#allocation10 + $0x8] sm:$0xff] %vm100_vm1, %v972_v6  ;;  %v1045_v7 = vpop.f32.mrb[10].mxu0  ;;  %v1562_v8 = vpop.f32.mrb[9].mxu1 }
 0x33a   :  { %1416 = vst.msk [vmem:[#allocation10 + $0x10] sm:$0xff] %vm100_vm1, %v1045_v7  ;;  %v1567_v9 = vpop.f32.mrb[11].mxu0 }
 0x33c   :  { %v1118_v10 = vpop.f32.mrb[10].mxu1 }
 0x33d   :  { %1417 = vst.msk [vmem:[#allocation10 + $0x18] sm:$0xff] %vm100_vm1, %v1118_v10  ;;  %v1191_v11 = vpop.f32.mrb[12].mxu0  ;;  %v1572_v12 = vpop.f32.mrb[11].mxu1 }
 0x33e   :  { %1418 = vst.msk [vmem:[#allocation10 + $0x20] sm:$0xff] %vm100_vm1, %v1191_v11  ;;  %v1577_v13 = vpop.f32.mrb[13].mxu0 }
 0x340   :  { %v1264_v14 = vpop.f32.mrb[12].mxu1 }
 0x341   :  { %1419 = vst.msk [vmem:[#allocation10 + $0x28] sm:$0xff] %vm100_vm1, %v1264_v14  ;;  %v1337_v15 = vpop.f32.mrb[14].mxu0  ;;  %v1582_v16 = vpop.f32.mrb[13].mxu1 }
 0x342   :  { %1420 = vst.msk [vmem:[#allocation10 + $0x30] sm:$0xff] %vm100_vm1, %v1337_v15  ;;  %v1587_v17 = vpop.f32.mrb[15].mxu0 }
 0x344   :  { %v1410_v18 = vpop.f32.mrb[14].mxu1 }
 0x345   :  { %1421 = vst.msk [vmem:[#allocation10 + $0x38] sm:$0xff] %vm100_vm1, %v1410_v18  ;;  %v1592_v19 = vpop.f32.mrb[15].mxu1 }
 0x346   :  { %1756 = shalt.err (!%p1753_p2)
}
 0x347   :  { %s1757_s7 = scalar_lea.hbm %s2049_s4, 1024 }
 0x348   :  { %p1758_p3 = scmp.ne.s32.totalorder %s2049_s4, %s1757_s7  ;;  %p1761_p4 = scmp.lt.u32.totalorder %s1757_s7, %s2049_s4 }
 0x34a   :  { %p1763_p5 = pnand %p1761_p4, %p1758_p3 }
 0x34c   :  { %1766 = shalt.err (!%p1763_p5)
}
 0x34d   :  { %1433 = dma.vmem_to_hbm [thread:$0]  %s1428_s28, 1024, %s2049_s4, [#allocation4], %s1779_s30, %s1779_s30, %s1780_s6  }
 0x34e   :  { %1773 = dma.done.wait [#allocation4], 1024  }
 0x34f   :  { %1774 = vsyncadd [#allocation4], 4294966272 }
 0x350   :  { %1775 = dma.done.wait [#allocation12], 1024  }
 0x351   :  { %1776 = vsyncadd [#allocation12], 4294966272 }
 0x352   :  { %1452 = vsyncpa [#allocation3], 1 }
 0x353   :  { %1453 = vsyncpa [#allocation6], 1 }
 0x354   :  { %1454 = vsyncpa [#allocation9], 1 }
 0x355   :  { %1455 = vsyncpa [#allocation4], 1 }
 0x356   :  { %1456 = vsyncpa [#allocation12], 1 }

</bundles_post_ra>
